<compile_context>
chip_gen: v7x
topology: tpu7x:2x2x1
jax: 0.10.0
libtpu: 0.0.40
codegen_flags: <defaults>
</compile_context>

<pallas_src>
import functools

import jax
import jax.numpy as jnp
from jax.experimental import pallas as pl
from jax.experimental.pallas import tpu as pltpu


def _round_up(x, m):
    return (x + m - 1) // m * m


def adapter_kernel(x_ref,               # (TM, D)  input rows
                   lnw_ref, lnb_ref,    # (1, D)   layernorm gamma / beta
                   w1_ref, b1_ref,      # (D, BNp), (1, BNp)
                   w2_ref, b2_ref,      # (BNp, D), (1, D)
                   o_ref,               # (TM, D)  output rows
                   *, eps):
    x = x_ref[...].astype(jnp.float32)

    # --- LayerNorm over the embedding (lane) axis ---
    mu = jnp.mean(x, axis=-1, keepdims=True)
    var = jnp.mean(jnp.square(x - mu), axis=-1, keepdims=True)
    xn = (x - mu) * jax.lax.rsqrt(var + eps)
    xn = xn * lnw_ref[...].astype(jnp.float32) + lnb_ref[...].astype(jnp.float32)

    # --- fc1 -> relu (MXU matmul, f32 accumulation) ---
    h = jnp.dot(xn, w1_ref[...], preferred_element_type=jnp.float32)
    h = jnp.maximum(h + b1_ref[...].astype(jnp.float32), 0.0)

    # --- fc2 ---
    h = jnp.dot(h, w2_ref[...], preferred_element_type=jnp.float32)
    h = h + b2_ref[...].astype(jnp.float32)

    # --- residual: re-read x from the already-resident VMEM input block ---
    o_ref[...] = (x_ref[...].astype(jnp.float32) + h).astype(o_ref.dtype)


def adapter_forward(x, params, *, eps=1e-5, tm=256,
                    vmem_limit_bytes=48 * 1024 * 1024):
    """x: (B, S, D) float32.  params: dict from init_params (w1:(D,BN), w2:(BN,D))."""
    B, S, D = x.shape
    N = B * S
    BN = params["w1"].shape[1]

    # --- pad bottleneck dim to a lane-dense multiple of 128.
    #     Zero fc1 columns / fc2 rows contribute nothing to the output.
    BNp = _round_up(max(BN, 1), 128)
    w1, b1, w2 = params["w1"], params["b1"], params["w2"]
    if BNp != BN:
        w1 = jnp.pad(w1, ((0, 0), (0, BNp - BN)))
        b1 = jnp.pad(b1, ((0, 0), (0, BNp - BN)))
        w2 = jnp.pad(w2, ((0, BNp - BN), (0, 0)))

    # --- row tiling: large tiles, padded tail (no divisibility requirement) ---
    tm = _round_up(min(tm, _round_up(N, 8)), 8)
    n_pad = _round_up(N, tm)
    xf = x.reshape(N, D)
    if n_pad != N:
        # Padded rows produce harmless values (LN of zeros is finite via eps)
        # and are sliced away after the call.
        xf = jnp.pad(xf, ((0, n_pad - N), (0, 0)))
    grid = (n_pad // tm,)

    row_spec = pl.BlockSpec((tm, D), lambda i: (i, 0))

    def weight_spec(shape):
        # Grid-invariant operand (constant index_map): single-buffer it so the
        # weights/biases are resident once instead of double-buffered.
        return pl.BlockSpec(shape, lambda i: (0, 0),
                            pipeline_mode=pl.Buffered(1))

    kernel = functools.partial(adapter_kernel, eps=eps)

    bytes_per = jnp.dtype(x.dtype).itemsize
    cost = pl.CostEstimate(
        flops=2 * n_pad * D * BNp * 2 + 10 * n_pad * D,
        transcendentals=n_pad,  # one rsqrt per row
        bytes_accessed=(2 * n_pad * D + 2 * D * BNp + BNp + 3 * D) * bytes_per,
    )

    out = pl.pallas_call(
        kernel,
        out_shape=jax.ShapeDtypeStruct((n_pad, D), x.dtype),
        grid_spec=pltpu.PrefetchScalarGridSpec(
            num_scalar_prefetch=0,
            grid=grid,
            in_specs=[
                row_spec,                                       # x rows
                weight_spec((1, D)), weight_spec((1, D)),       # ln gamma/beta
                weight_spec((D, BNp)), weight_spec((1, BNp)),   # fc1 w, b
                weight_spec((BNp, D)), weight_spec((1, D)),     # fc2 w, b
            ],
            out_specs=row_spec,
        ),
        compiler_params=pltpu.CompilerParams(
            dimension_semantics=("parallel",),
            vmem_limit_bytes=vmem_limit_bytes),
        cost_estimate=cost,
    )(xf, params["ln_w"], params["ln_b"], w1, b1, w2, params["b2"])

    return out[:N].reshape(B, S, D)


def reference_forward(x, params, eps=1e-5):
    """Pure-JAX reference matching the PyTorch Adapter semantics."""
    mu = jnp.mean(x, axis=-1, keepdims=True)
    var = jnp.mean(jnp.square(x - mu), axis=-1, keepdims=True)
    xn = (x - mu) / jnp.sqrt(var + eps)
    xn = xn * params["ln_w"][0] + params["ln_b"][0]
    h = jnp.maximum(xn @ params["w1"] + params["b1"][0], 0.0)
    h = h @ params["w2"] + params["b2"][0]
    return x + h


def init_params(key, n_embd, bottleneck):
    ks = jax.random.split(key, 6)
    s1 = 1.0 / jnp.sqrt(n_embd)
    s2 = 1.0 / jnp.sqrt(bottleneck)
    return {
        "ln_w": 1.0 + 0.1 * jax.random.normal(ks[0], (1, n_embd), jnp.float32),
        "ln_b": 0.1 * jax.random.normal(ks[1], (1, n_embd), jnp.float32),
        "w1": jax.random.uniform(ks[2], (n_embd, bottleneck), jnp.float32, -s1, s1),
        "b1": jax.random.uniform(ks[3], (1, bottleneck), jnp.float32, -s1, s1),
        "w2": jax.random.uniform(ks[4], (bottleneck, n_embd), jnp.float32, -s2, s2),
        "b2": jax.random.uniform(ks[5], (1, n_embd), jnp.float32, -s2, s2),
    }


if __name__ == "__main__":
    key = jax.random.PRNGKey(0)
    k1, k2, k3, k4 = jax.random.split(key, 4)

    # small GPT-2-like config: batch=2, seq=8, n_embd=32, bottleneck=16
    B, S, D, BN = 2, 8, 32, 16
    x = jax.random.normal(k1, (B, S, D), jnp.float32)
    params = init_params(k2, D, BN)

    out = jax.block_until_ready(adapter_forward(x, params))
    ref = reference_forward(x, params)
    assert out.shape == (B, S, D)
    assert jnp.allclose(out, ref, atol=1e-4, rtol=1e-4), \
        f"max err {jnp.max(jnp.abs(out - ref))}"

    # second config exercising BN padding, the padded row tail and a 2-step grid
    B2, S2, D2, BN2 = 3, 100, 128, 64          # N=300 -> padded to 512, grid=(2,)
    x2 = jax.random.normal(k3, (B2, S2, D2), jnp.float32)
    params2 = init_params(k4, D2, BN2)
    out2 = jax.block_until_ready(adapter_forward(x2, params2))
    ref2 = reference_forward(x2, params2)
    assert out2.shape == (B2, S2, D2)
    assert jnp.allclose(out2, ref2, atol=1e-4, rtol=1e-4), \
        f"max err {jnp.max(jnp.abs(out2 - ref2))}"

    print("KERNEL_OK")
</pallas_src>

<mosaic_0001>
module attributes {stable_mosaic.version = 11 : i64} {
  func.func @adapter_kernel(%arg0: i32, %arg1: memref<16x32xf32, #tpu.memory_space<vmem>>, %arg2: memref<1x32xf32, #tpu.memory_space<vmem>>, %arg3: memref<1x32xf32, #tpu.memory_space<vmem>>, %arg4: memref<32x128xf32, #tpu.memory_space<vmem>>, %arg5: memref<1x128xf32, #tpu.memory_space<vmem>>, %arg6: memref<128x32xf32, #tpu.memory_space<vmem>>, %arg7: memref<1x32xf32, #tpu.memory_space<vmem>>, %arg8: memref<16x32xf32, #tpu.memory_space<vmem>>) attributes {dimension_semantics = [#tpu.dimension_semantics<parallel>], iteration_bounds = array<i64: 1>, scalar_prefetch = 0 : i64, scratch_operands = 0 : i64, tpu.core_type = #tpu.core_type<tc>, window_params = [{transform_indices = @transform_0, window_bounds = array<i64: 16, 32>}, {pipeline_mode = #tpu.pipeline_mode<synchronous>, transform_indices = @transform_1, window_bounds = array<i64: 1, 32>}, {pipeline_mode = #tpu.pipeline_mode<synchronous>, transform_indices = @transform_2, window_bounds = array<i64: 1, 32>}, {pipeline_mode = #tpu.pipeline_mode<synchronous>, transform_indices = @transform_3, window_bounds = array<i64: 32, 128>}, {pipeline_mode = #tpu.pipeline_mode<synchronous>, transform_indices = @transform_4, window_bounds = array<i64: 1, 128>}, {pipeline_mode = #tpu.pipeline_mode<synchronous>, transform_indices = @transform_5, window_bounds = array<i64: 128, 32>}, {pipeline_mode = #tpu.pipeline_mode<synchronous>, transform_indices = @transform_6, window_bounds = array<i64: 1, 32>}, {transform_indices = @transform_7, window_bounds = array<i64: 16, 32>}]} {
    %c0 = arith.constant 0 : index
    %c0_0 = arith.constant 0 : index
    %0 = vector.load %arg1[%c0, %c0_0] : memref<16x32xf32, #tpu.memory_space<vmem>>, vector<16x32xf32>
    %cst = arith.constant dense<0.000000e+00> : vector<16xf32>
    %1 = vector.multi_reduction <add>, %0, %cst [1] : vector<16x32xf32> to vector<16xf32>
    %2 = vector.shape_cast %1 : vector<16xf32> to vector<16x1xf32>
    %cst_1 = arith.constant 3.200000e+01 : f32
    %3 = vector.broadcast %cst_1 : f32 to vector<16x1xf32>
    %4 = arith.divf %2, %3 : vector<16x1xf32>
    %5 = vector.broadcast %4 : vector<16x1xf32> to vector<16x32xf32>
    %6 = arith.subf %0, %5 : vector<16x32xf32>
    %7 = arith.mulf %6, %6 : vector<16x32xf32>
    %cst_2 = arith.constant dense<0.000000e+00> : vector<16xf32>
    %8 = vector.multi_reduction <add>, %7, %cst_2 [1] : vector<16x32xf32> to vector<16xf32>
    %9 = vector.shape_cast %8 : vector<16xf32> to vector<16x1xf32>
    %cst_3 = arith.constant 3.200000e+01 : f32
    %10 = vector.broadcast %cst_3 : f32 to vector<16x1xf32>
    %11 = arith.divf %9, %10 : vector<16x1xf32>
    %12 = vector.broadcast %4 : vector<16x1xf32> to vector<16x32xf32>
    %13 = arith.subf %0, %12 : vector<16x32xf32>
    %cst_4 = arith.constant 9.99999974E-6 : f32
    %14 = vector.broadcast %cst_4 : f32 to vector<16x1xf32>
    %15 = arith.addf %11, %14 : vector<16x1xf32>
    %16 = math.rsqrt %15 : vector<16x1xf32>
    %17 = vector.broadcast %16 : vector<16x1xf32> to vector<16x32xf32>
    %18 = arith.mulf %13, %17 : vector<16x32xf32>
    %c0_5 = arith.constant 0 : index
    %c0_6 = arith.constant 0 : index
    %19 = vector.load %arg2[%c0_5, %c0_6] : memref<1x32xf32, #tpu.memory_space<vmem>>, vector<1x32xf32>
    %20 = vector.broadcast %19 : vector<1x32xf32> to vector<16x32xf32>
    %21 = arith.mulf %18, %20 : vector<16x32xf32>
    %c0_7 = arith.constant 0 : index
    %c0_8 = arith.constant 0 : index
    %22 = vector.load %arg3[%c0_7, %c0_8] : memref<1x32xf32, #tpu.memory_space<vmem>>, vector<1x32xf32>
    %23 = vector.broadcast %22 : vector<1x32xf32> to vector<16x32xf32>
    %24 = arith.addf %21, %23 : vector<16x32xf32>
    %c0_9 = arith.constant 0 : index
    %c0_10 = arith.constant 0 : index
    %25 = vector.load %arg4[%c0_9, %c0_10] : memref<32x128xf32, #tpu.memory_space<vmem>>, vector<32x128xf32>
    %cst_11 = arith.constant dense<0.000000e+00> : vector<16x128xf32>
    %26 = tpu.matmul %24, %25, %cst_11 {dimension_numbers = #tpu.dot_dimension_numbers<[1], [0], [0], [1], [0, 0, 1, 1], [], []>} : vector<16x32xf32>, vector<32x128xf32>, vector<16x128xf32> -> vector<16x128xf32>
    %c0_12 = arith.constant 0 : index
    %c0_13 = arith.constant 0 : index
    %27 = vector.load %arg5[%c0_12, %c0_13] : memref<1x128xf32, #tpu.memory_space<vmem>>, vector<1x128xf32>
    %28 = vector.broadcast %27 : vector<1x128xf32> to vector<16x128xf32>
    %29 = arith.addf %26, %28 : vector<16x128xf32>
    %cst_14 = arith.constant 0.000000e+00 : f32
    %30 = vector.broadcast %cst_14 : f32 to vector<16x128xf32>
    %31 = arith.maximumf %29, %30 : vector<16x128xf32>
    %c0_15 = arith.constant 0 : index
    %c0_16 = arith.constant 0 : index
    %32 = vector.load %arg6[%c0_15, %c0_16] : memref<128x32xf32, #tpu.memory_space<vmem>>, vector<128x32xf32>
    %cst_17 = arith.constant dense<0.000000e+00> : vector<16x32xf32>
    %33 = tpu.matmul %31, %32, %cst_17 {dimension_numbers = #tpu.dot_dimension_numbers<[1], [0], [0], [1], [0, 0, 1, 1], [], []>} : vector<16x128xf32>, vector<128x32xf32>, vector<16x32xf32> -> vector<16x32xf32>
    %c0_18 = arith.constant 0 : index
    %c0_19 = arith.constant 0 : index
    %34 = vector.load %arg7[%c0_18, %c0_19] : memref<1x32xf32, #tpu.memory_space<vmem>>, vector<1x32xf32>
    %35 = vector.broadcast %34 : vector<1x32xf32> to vector<16x32xf32>
    %36 = arith.addf %33, %35 : vector<16x32xf32>
    %c0_20 = arith.constant 0 : index
    %c0_21 = arith.constant 0 : index
    %37 = vector.load %arg1[%c0_20, %c0_21] : memref<16x32xf32, #tpu.memory_space<vmem>>, vector<16x32xf32>
    %38 = arith.addf %37, %36 : vector<16x32xf32>
    %c0_22 = arith.constant 0 : index
    %c0_23 = arith.constant 0 : index
    %39 = vector.load %arg8[%c0_22, %c0_23] : memref<16x32xf32, #tpu.memory_space<vmem>>, vector<16x32xf32>
    tpu.vector_store %arg8[%c0_22, %c0_23], %38 {strides = array<i32>} : memref<16x32xf32, #tpu.memory_space<vmem>>, vector<16x32xf32>,
    return
  }
  func.func @transform_0(%arg0: i32) -> (i32, i32) {
    %c0_i32 = arith.constant 0 : i32
    %c0_i32_0 = arith.constant 0 : i32
    return %arg0, %c0_i32 : i32, i32
  }
  func.func @transform_1(%arg0: i32) -> (i32, i32) {
    %c0_i32 = arith.constant 0 : i32
    %c0_i32_0 = arith.constant 0 : i32
    %c0_i32_1 = arith.constant 0 : i32
    return %c0_i32, %c0_i32_0 : i32, i32
  }
  func.func @transform_2(%arg0: i32) -> (i32, i32) {
    %c0_i32 = arith.constant 0 : i32
    %c0_i32_0 = arith.constant 0 : i32
    %c0_i32_1 = arith.constant 0 : i32
    return %c0_i32, %c0_i32_0 : i32, i32
  }
  func.func @transform_3(%arg0: i32) -> (i32, i32) {
    %c0_i32 = arith.constant 0 : i32
    %c0_i32_0 = arith.constant 0 : i32
    %c0_i32_1 = arith.constant 0 : i32
    return %c0_i32, %c0_i32_0 : i32, i32
  }
  func.func @transform_4(%arg0: i32) -> (i32, i32) {
    %c0_i32 = arith.constant 0 : i32
    %c0_i32_0 = arith.constant 0 : i32
    %c0_i32_1 = arith.constant 0 : i32
    return %c0_i32, %c0_i32_0 : i32, i32
  }
  func.func @transform_5(%arg0: i32) -> (i32, i32) {
    %c0_i32 = arith.constant 0 : i32
    %c0_i32_0 = arith.constant 0 : i32
    %c0_i32_1 = arith.constant 0 : i32
    return %c0_i32, %c0_i32_0 : i32, i32
  }
  func.func @transform_6(%arg0: i32) -> (i32, i32) {
    %c0_i32 = arith.constant 0 : i32
    %c0_i32_0 = arith.constant 0 : i32
    %c0_i32_1 = arith.constant 0 : i32
    return %c0_i32, %c0_i32_0 : i32, i32
  }
  func.func @transform_7(%arg0: i32) -> (i32, i32) {
    %c0_i32 = arith.constant 0 : i32
    %c0_i32_0 = arith.constant 0 : i32
    return %arg0, %c0_i32 : i32, i32
  }
}

</mosaic_0001>

<bundles_post_ra>
// kernel: tpu_custom_call.1
= control target key start
LH: loop header
LB: loop body
LE: loop exit
PB: predicated region body
PF: predicated region fallthrough
CT: control target
= control target key end

     0   :  { %vm29_vm0 = vcmask 261120   ;;  %s595_s0 = inlined_call_operand.vmem [shape: f32[16,32], index: 0, kind: input, shape index: {}]   ;;  %s596_s1 = inlined_call_operand.vmem [shape: f32[1,32], index: 1, kind: input, shape index: {}]   ;;  %s597_s2 = inlined_call_operand.vmem [shape: f32[1,32], index: 2, kind: input, shape index: {}]   ;;  %s598_s3 = inlined_call_operand.vmem [shape: f32[32,128], index: 3, kind: input, shape index: {}]   ;;  %s599_s4 = inlined_call_operand.vmem [shape: f32[1,128], index: 4, kind: input, shape index: {}]   ;;  %s600_s5 = inlined_call_operand.vmem [shape: f32[128,32], index: 5, kind: input, shape index: {}]   ;;  %s601_s6 = inlined_call_operand.vmem [shape: f32[1,32], index: 6, kind: input, shape index: {}]   ;;  %s602_s7 = inlined_call_operand.hbm [shape: f32[16,32], index: 7, kind: output, shape index: {}]  }
   0x1   :  { %v480_v0 = vld [vmem:[%s595_s0] sm:$0xff]  ;;  %v485_v1 = vld [vmem:[%s595_s0 + $0x8] sm:$0xff] }
   0x2   :  { %12 = vsyncpa [#allocation3], 0  ;;  %v30_v2 = vsel %vm29_vm0, %v480_v0, 0.0  ;;  %v33_v3 = vsel %vm29_vm0, %v485_v1, 0.0  ;;  %v75_v14 = vld [vmem:[%s598_s3] sm:$0xff]  ;;  %v76_v15 = vld [vmem:[%s598_s3 + $0x8] sm:$0xff] }
   0x3   :  { %31 = vadd.xlane.f32.xlu0 %v30_v2  ;;  %v77_v16 = vld [vmem:[%s598_s3 + $0x10] sm:$0xff]  ;;  %v363_v17 = vpack.c.bf16 %v76_v15, %v75_v14  ;;  %v78_v18 = vld [vmem:[%s598_s3 + $0x18] sm:$0xff]  ;;  %v169_v20 = vld [vmem:[%s600_s5] sm:$0xff] }
   0x4   :  { %v367_v19 = vpack.c.bf16 %v78_v18, %v77_v16  ;;  %v170_v21 = vld [vmem:[%s600_s5 + $0x8] sm:$0xff]  ;;  %v171_v22 = vld [vmem:[%s600_s5 + $0x10] sm:$0xff]  ;;  %v172_v24 = vld [vmem:[%s600_s5 + $0x18] sm:$0xff] }
   0x5   :  { %364 = vmatprep.subr.bf16.mxu0 %v363_v17  ;;  %v371_v23 = vpack.c.bf16 %v170_v21, %v169_v20  ;;  %v375_v25 = vpack.c.bf16 %v172_v24, %v171_v22  ;;  %v173_v26 = vld [vmem:[%s600_s5 + $0x20] sm:$0xff]  ;;  %v174_v27 = vld [vmem:[%s600_s5 + $0x28] sm:$0xff]  ;;  %v175_v29 = vld [vmem:[%s600_s5 + $0x30] sm:$0xff] }
   0x6   :  { %366 = vmatpush3.bf16.msra.mxu0 %v363_v17  ;;  %v379_v28 = vpack.c.bf16 %v174_v27, %v173_v26  ;;  %v176_v30 = vld [vmem:[%s600_s5 + $0x38] sm:$0xff]  ;;  %v177_v32 = vld [vmem:[%s600_s5 + $0x40] sm:$0xff]  ;;  %v178_v33 = vld [vmem:[%s600_s5 + $0x48] sm:$0xff] }
   0x7   :  { %34 = vadd.xlane.f32.xlu0 %v33_v3  ;;  %368 = vmatprep.subr.bf16.mxu0 %v367_v19  ;;  %v383_v31 = vpack.c.bf16 %v176_v30, %v175_v29  ;;  %v387_v34 = vpack.c.bf16 %v178_v33, %v177_v32  ;;  %v179_v35 = vld [vmem:[%s600_s5 + $0x50] sm:$0xff]  ;;  %v180_v36 = vld [vmem:[%s600_s5 + $0x58] sm:$0xff]  ;;  %v181_v38 = vld [vmem:[%s600_s5 + $0x60] sm:$0xff] }
   0x8   :  { %372 = vmatprep.subr.bf16.mxu1 %v371_v23  ;;  %v391_v37 = vpack.c.bf16 %v180_v36, %v179_v35  ;;  %v182_v39 = vld [vmem:[%s600_s5 + $0x68] sm:$0xff]  ;;  %v287_v48 = vld [vmem:[%s596_s1] ss:$0 sm:$0xff]  ;;  %v183_v57 = vld [vmem:[%s600_s5 + $0x70] sm:$0xff] }
   0x9   :  { %374 = vmatpush3.bf16.msra.mxu1 %v371_v23  ;;  %v395_v40 = vpack.c.bf16 %v182_v39, %v181_v38  ;;  %v288_v50 = vld [vmem:[%s597_s2] ss:$0 sm:$0xff]  ;;  %v184_v58 = vld [vmem:[%s600_s5 + $0x78] sm:$0xff]  ;;  %s434_s5 = smov [#allocation2]  }
   0xa   :  { %370 = vmatpush3.bf16.msra.mxu0 %v367_v19  ;;  %376 = vmatprep.subr.bf16.mxu1 %v375_v25  ;;  %v399_v59 = vpack.c.bf16 %v184_v58, %v183_v57  ;;  %v289_v60 = vld [vmem:[%s599_s4] ss:$0 sm:$0xff]  ;;  %s276_s24 = sshll.u32 %s434_s5, 4  ;;  %s277_s24 = int_to_ptr.vmem [resolvable:$true] %s276_s24 }
   0xb   :  { %s410_s4 = scalar_lea.vmem %s277_s24, 256  ;;  %p415_p1 = scmp.lt.s32.totalorder %s277_s24, %s277_s24 }
   0xc   :  { %p411_p0 = scmp.ne.s32.totalorder %s277_s24, %s410_s4  ;;  %p416_p2 = scmp.lt.s32.totalorder %s410_s4, %s410_s4 }
   0xd   :  { %378 = vmatpush3.bf16.msra.mxu1 %v375_v25 }
   0xe   :  { %380 = vmatprep.subr.bf16.mxu1 %v379_v28  ;;  %p417_p3 = por %p416_p2, %p415_p1 }
  0x10   :  { %p418_p4 = pnand %p417_p3, %p411_p0 }
  0x11   :  { %382 = vmatpush3.bf16.msra.mxu1 %v379_v28 }
  0x12   :  { %384 = vmatprep.subr.bf16.mxu1 %v383_v31 }
  0x15   :  { %386 = vmatpush3.bf16.msra.mxu1 %v383_v31 }
  0x16   :  { %388 = vmatprep.subr.bf16.mxu1 %v387_v34 }
  0x19   :  { %390 = vmatpush3.bf16.msra.mxu1 %v387_v34 }
  0x1a   :  { %392 = vmatprep.subr.bf16.mxu1 %v391_v37 }
  0x1d   :  { %394 = vmatpush3.bf16.msra.mxu1 %v391_v37 }
  0x1e   :  { %396 = vmatprep.subr.bf16.mxu1 %v395_v40 }
  0x21   :  { %398 = vmatpush3.bf16.msra.mxu1 %v395_v40 }
  0x22   :  { %400 = vmatprep.subr.bf16.mxu1 %v399_v59 }
  0x25   :  { %402 = vmatpush3.bf16.msra.mxu1 %v399_v59 }
  0x90   :  { %v32_v4 = vpop.xlane.xlu0 %31 }
  0x91   :  { %v37_v5 = vmul.f32 0.03125, %v32_v4 }
  0x93   :  { %v492_v6 = vsub.f32 %v480_v0, %v37_v5  ;;  %v292_v5 = vld [vmem:[%s601_s6] ss:$0 sm:$0xff] }
  0x94   :  { %v35_v7 = vpop.xlane.xlu0 %34 }
  0x95   :  { %v38_v8 = vmul.f32 0.03125, %v35_v7  ;;  %v41_v9 = vmul.f32 %v492_v6, %v492_v6 }
  0x97   :  { %v497_v10 = vsub.f32 %v485_v1, %v38_v8  ;;  %v43_v11 = vsel %vm29_vm0, %v41_v9, 0.0 }
  0x98   :  { %44 = vadd.xlane.f32.xlu1 %v43_v11 }
  0x99   :  { %v42_v12 = vmul.f32 %v497_v10, %v497_v10 }
  0x9b   :  { %v46_v13 = vsel %vm29_vm0, %v42_v12, 0.0 }
  0x9c   :  { %47 = vadd.xlane.f32.xlu1 %v46_v13 }
 0x125   :  { %v45_v41 = vpop.xlane.xlu1 %44 }
 0x126   :  { %v49_v42 = vmul.f32 0.03125, %v45_v41 }
 0x128   :  { %v51_v43 = vadd.f32 1e-05, %v49_v42 }
 0x129   :  { %v48_v44 = vpop.xlane.xlu1 %47 }
 0x12a   :  { %406 = vrsqrt.f32 %v51_v43  ;;  %v50_v45 = vmul.f32 0.03125, %v48_v44 }
 0x12c   :  { %v52_v46 = vadd.f32 1e-05, %v50_v45 }
 0x12e   :  { %408 = vrsqrt.f32 %v52_v46 }
 0x134   :  { %v407_v47 = vpop.eup %406 }
 0x135   :  { %v55_v49 = vmul.f32 %v407_v47, %v492_v6 }
 0x137   :  { %v64_v51 = vmul.f32 %v287_v48, %v55_v49 }
 0x138   :  { %v409_v52 = vpop.eup %408 }
 0x139   :  { %v56_v53 = vmul.f32 %v409_v52, %v497_v10  ;;  %v73_v54 = vadd.f32 %v288_v50, %v64_v51 }
 0x13b   :  { %v65_v55 = vmul.f32 %v287_v48, %v56_v53  ;;  %325 = vmatprep.mubr.msk.f32.mxu0 %vm29_vm0, %v73_v54 }
 0x13d   :  { %v74_v56 = vadd.f32 %v288_v50, %v65_v55 }
 0x13f   :  { %326 = vmatmul.mubr.msk.f32.vlgmr.msra.gmra.mrb[0].mxu0 %vm29_vm0, %v74_v56 }
 0x212   :  { %v327_v61 = vpop.f32.mrb[0].mxu0 }
 0x213   :  { %v164_v62 = vadd.f32 %v327_v61, %v289_v60  ;;  %v158_v63 = vpop.f32.mrb[1].mxu0 }
 0x214   :  { %v159_v2 = vadd.f32 %v289_v60, %v158_v63 }
 0x215   :  { %v168_v4 = vmax.f32 %v164_v62, 0.0 }
 0x216   :  { %v167_v3 = vmax.f32 %v159_v2, 0.0 }
 0x218   :  { %360 = vmatprep.mubr.f32.mxu1 %v167_v3 }
 0x219   :  { %361 = vmatmul.mubr.f32.vlgmr.msra.gmra.mrb[0].mxu1 %v168_v4 }
 0x2ec   :  { %v362_v6 = vpop.f32.mrb[0].mxu1 }
 0x2ed   :  { %v264_v7 = vadd.f32 %v362_v6, %v292_v5  ;;  %v258_v8 = vpop.f32.mrb[1].mxu1 }
 0x2ee   :  { %v259_v9 = vadd.f32 %v292_v5, %v258_v8 }
 0x2ef   :  { %v268_v10 = vadd.f32 %v264_v7, %v485_v1 }
 0x2f0   :  { %v267_v11 = vadd.f32 %v259_v9, %v480_v0 }
 0x2f1   :  { %270 = vst.msk [vmem:[#allocation2 + $0x8] sm:$0xff] %vm29_vm0, %v268_v10 }
 0x2f2   :  { %269 = vst.msk [vmem:[#allocation2] sm:$0xff] %vm29_vm0, %v267_v11 }
 0x2f3   :  { %421 = shalt.err (!%p418_p4)
}
 0x2f4   :  { %s422_s26 = scalar_lea.hbm %s602_s7, 256 }
 0x2f5   :  { %p423_p5 = scmp.ne.s32.totalorder %s602_s7, %s422_s26  ;;  %p426_p6 = scmp.lt.u32.totalorder %s422_s26, %s602_s7 }
 0x2f7   :  { %p428_p7 = pnand %p426_p6, %p423_p5 }
 0x2f9   :  { %431 = shalt.err (!%p428_p7)
}
 0x2fa   :  { %s435_s30 = smov 128   ;;  %s436_s8 = smov 8  }
 0x2fb   :  { %282 = dma.vmem_to_hbm [thread:$0]  %s277_s24, 256, %s602_s7, [#allocation3], %s435_s30, %s435_s30, %s436_s8  }
 0x2fc   :  { %432 = dma.done.wait [#allocation3], 256  }
 0x2fd   :  { %433 = vsyncadd [#allocation3], 4294967040 }
 0x2fe   :  { %286 = vsyncpa [#allocation3], 1 }

</bundles_post_ra>
